<compile_context>
chip_gen: v6e
topology: v6e:2x2x1
jax: 0.10.0
libtpu: 0.0.40
codegen_flags: <defaults>
</compile_context>

<pallas_src>
import jax
import jax.numpy as jnp
import numpy as np
from jax.experimental import pallas as pl
from jax.experimental.pallas import tpu as pltpu


def _round_up(x, m):
    return (x + m - 1) // m * m


def _context_adaptor_kernel(x1_ref, x9_ref, x15_ref,
                            kt_ref, v_ref, wqt_ref, wot_ref,
                            bq_ref, bo_ref,
                            out_ref):
    # x*_ref : (R, E)  row tile of each selected encoder layer (B*T flattened)
    # kt_ref : (E, N)  pre-projected, pre-transposed keys   (batch-invariant)
    # v_ref  : (N, E)  pre-projected values                 (batch-invariant)
    # wqt_ref: (E, E)  Wq^T pre-scaled by 1/sqrt(E);  wot_ref: (E, E)  Wo^T
    # bq_ref : (1, E)  bq pre-scaled by 1/sqrt(E);    bo_ref : (1, E)
    # out_ref: (R, E)
    x = 0.5 * x1_ref[...] + 0.25 * x9_ref[...] + 0.25 * x15_ref[...]     # (R, E) f32

    mm_dtype = wqt_ref.dtype  # f32 by default; bf16 when matmul_dtype=bfloat16

    q = jnp.dot(x.astype(mm_dtype), wqt_ref[...],
                preferred_element_type=jnp.float32) + bq_ref[...]         # (R, E)
    scores = jnp.dot(q.astype(mm_dtype), kt_ref[...],
                     preferred_element_type=jnp.float32)                  # (R, N)

    m = jnp.max(scores, axis=-1, keepdims=True)                           # (R, 1)
    e = jnp.exp(scores - m)
    denom = jnp.sum(e, axis=-1, keepdims=True)
    attn = e * pl.reciprocal(denom, approx=True)                          # (R, N)

    ctx = jnp.dot(attn.astype(mm_dtype), v_ref[...],
                  preferred_element_type=jnp.float32)                     # (R, E)
    out = jnp.dot(ctx.astype(mm_dtype), wot_ref[...],
                  preferred_element_type=jnp.float32) + bo_ref[...]       # (R, E)

    # torch.argmax(attn_weights, dim=-1) == 0  <=>  scores[:, 0] attains the
    # row max (softmax is monotone; scores are exact f32, ties map to True,
    # matching torch.argmax first-max semantics).
    blank = scores[:, 0:1] >= m                                           # (R, 1)
    out_ref[...] = jnp.where(blank, jnp.float32(0.0), out).astype(out_ref.dtype)


def context_adaptor_forward(encoder_layer_outs, cv_encoder_out, params,
                            *, rows_tile=256, matmul_dtype=jnp.float32):
    """encoder_layer_outs: list of (B, T, E); cv_encoder_out: (1, N, E).

    rows_tile:    row-tile size over the flattened (B*T) axis (multiple of 8).
    matmul_dtype: jnp.float32 (default) or jnp.bfloat16 (MXU inputs on
                  v6e/v7x; accumulation stays f32).
    """
    lm1 = encoder_layer_outs[-1]
    lm9 = encoder_layer_outs[-9]
    lm15 = encoder_layer_outs[-15]
    B, T, E = lm1.shape
    cv = cv_encoder_out[0]                      # (N, E); shared across batch
    N = cv.shape[0]

    # --- batch-invariant K/V path hoisted out of the grid (done once, tiny) ---
    k = cv @ params["wk"].T + params["bk"]      # (N, E)
    v = cv @ params["wv"].T + params["bv"]      # (N, E)
    k_t = jnp.transpose(k)                      # (E, N)  -> no in-kernel .T

    # --- pre-transpose / pre-scale projection weights (done once, tiny) ------
    scale = 1.0 / np.sqrt(np.float32(E))
    wq_t = jnp.transpose(params["wq"]) * scale              # (E, E), scale folded
    bq_s = (params["bq"] * scale).reshape(1, E).astype(jnp.float32)
    wo_t = jnp.transpose(params["wo"])                       # (E, E)
    bo = params["bo"].reshape(1, E).astype(jnp.float32)

    # Optional bf16 MXU inputs (v6e/v7x). Softmax / masking stay f32.
    wq_t = wq_t.astype(matmul_dtype)
    wo_t = wo_t.astype(matmul_dtype)
    k_t = k_t.astype(matmul_dtype)
    v = v.astype(matmul_dtype)

    # --- flatten (B, T) into one tiled row axis ------------------------------
    rows = B * T
    rt = min(rows_tile, _round_up(rows, 8))     # row tile, multiple of 8
    rows_pad = _round_up(rows, rt)

    def flat(a):
        a = a.reshape(rows, E)
        if rows_pad != rows:
            a = jnp.pad(a, ((0, rows_pad - rows), (0, 0)))
        return a

    x1, x9, x15 = flat(lm1), flat(lm9), flat(lm15)

    row_spec = pl.BlockSpec((rt, E), lambda r: (r, 0))
    shared = lambda shape: pl.BlockSpec(shape, lambda r: (0, 0))

    out = pl.pallas_call(
        _context_adaptor_kernel,
        out_shape=jax.ShapeDtypeStruct((rows_pad, E), jnp.float32),
        grid_spec=pltpu.PrefetchScalarGridSpec(
            num_scalar_prefetch=0,
            grid=(rows_pad // rt,),
            in_specs=[
                row_spec,          # layer_outs[-1]   (flattened rows)
                row_spec,          # layer_outs[-9]
                row_spec,          # layer_outs[-15]
                shared((E, N)),    # k^T
                shared((N, E)),    # v
                shared((E, E)),    # Wq^T * 1/sqrt(E)
                shared((E, E)),    # Wo^T
                shared((1, E)),    # bq * 1/sqrt(E)
                shared((1, E)),    # bo
            ],
            out_specs=row_spec,
        ),
        compiler_params=pltpu.CompilerParams(
            dimension_semantics=("parallel",),     # long row grid -> megacore on v7x
            vmem_limit_bytes=48 * 1024 * 1024,     # safe under v7x's 64 MiB physical
        ),
    )(x1, x9, x15, k_t, v, wq_t, wo_t, bq_s, bo)

    return out[:rows].reshape(B, T, E)


def reference_forward(encoder_layer_outs, cv_encoder_out, params):
    """Plain-JAX reference matching torch.nn.MultiheadAttention(num_heads=1, eval)."""
    x = (0.5 * encoder_layer_outs[-1]
         + 0.25 * encoder_layer_outs[-9]
         + 0.25 * encoder_layer_outs[-15])                     # (B, T, E)
    B, T, E = x.shape
    cv = jnp.broadcast_to(cv_encoder_out, (B,) + cv_encoder_out.shape[1:])  # (B, N, E)

    q = x @ params["wq"].T + params["bq"]
    k = cv @ params["wk"].T + params["bk"]
    v = cv @ params["wv"].T + params["bv"]
    scores = (q @ jnp.swapaxes(k, -1, -2)) / jnp.sqrt(jnp.float32(E))
    attn = jax.nn.softmax(scores, axis=-1)                     # (B, T, N)
    out = (attn @ v) @ params["wo"].T + params["bo"]           # (B, T, E)
    mask = jnp.argmax(attn, axis=2) == 0                       # (B, T)
    return jnp.where(mask[..., None], 0.0, out)


if __name__ == "__main__":
    # small shapes consistent with the module's forward
    B, T, E, N = 2, 64, 128, 8          # batch, maxlen, output_size, n_cv_terms
    NUM_LAYERS = 15                     # so that indices -1, -9, -15 are valid

    key = jax.random.PRNGKey(0)
    keys = jax.random.split(key, NUM_LAYERS + 10)

    encoder_layer_outs = [
        jax.random.normal(keys[i], (B, T, E), dtype=jnp.float32)
        for i in range(NUM_LAYERS)
    ]
    cv_encoder_out = jax.random.normal(keys[NUM_LAYERS], (1, N, E), dtype=jnp.float32)

    # Deterministic synthetic MultiheadAttention parameters
    # (torch: in_proj_weight (3E,E), in_proj_bias (3E,), out_proj (E,E)+(E,))
    s = 0.05
    params = {
        "wq": s * jax.random.normal(keys[NUM_LAYERS + 1], (E, E), dtype=jnp.float32),
        "wk": s * jax.random.normal(keys[NUM_LAYERS + 2], (E, E), dtype=jnp.float32),
        "wv": s * jax.random.normal(keys[NUM_LAYERS + 3], (E, E), dtype=jnp.float32),
        "wo": s * jax.random.normal(keys[NUM_LAYERS + 4], (E, E), dtype=jnp.float32),
        "bq": s * jax.random.normal(keys[NUM_LAYERS + 5], (E,), dtype=jnp.float32),
        "bk": s * jax.random.normal(keys[NUM_LAYERS + 6], (E,), dtype=jnp.float32),
        "bv": s * jax.random.normal(keys[NUM_LAYERS + 7], (E,), dtype=jnp.float32),
        "bo": s * jax.random.normal(keys[NUM_LAYERS + 8], (E,), dtype=jnp.float32),
    }

    out = context_adaptor_forward(encoder_layer_outs, cv_encoder_out, params)
    out = jax.block_until_ready(out)

    ref = jax.block_until_ready(
        reference_forward(encoder_layer_outs, cv_encoder_out, params))

    # tolerance accounts for the EUP approximate reciprocal in the softmax
    np.testing.assert_allclose(np.asarray(out), np.asarray(ref), rtol=2e-3, atol=2e-3)
    print("KERNEL_OK")
</pallas_src>

<mosaic_0001>
module attributes {stable_mosaic.version = 11 : i64} {
  func.func @_context_adaptor_kernel(%arg0: i32, %arg1: memref<128x128xf32, #tpu.memory_space<vmem>>, %arg2: memref<128x128xf32, #tpu.memory_space<vmem>>, %arg3: memref<128x128xf32, #tpu.memory_space<vmem>>, %arg4: memref<128x8xf32, #tpu.memory_space<vmem>>, %arg5: memref<8x128xf32, #tpu.memory_space<vmem>>, %arg6: memref<128x128xf32, #tpu.memory_space<vmem>>, %arg7: memref<128x128xf32, #tpu.memory_space<vmem>>, %arg8: memref<1x128xf32, #tpu.memory_space<vmem>>, %arg9: memref<1x128xf32, #tpu.memory_space<vmem>>, %arg10: memref<128x128xf32, #tpu.memory_space<vmem>>) attributes {dimension_semantics = [#tpu.dimension_semantics<parallel>], iteration_bounds = array<i64: 1>, scalar_prefetch = 0 : i64, scratch_operands = 0 : i64, tpu.core_type = #tpu.core_type<tc>, window_params = [{transform_indices = @transform_0, window_bounds = array<i64: 128, 128>}, {transform_indices = @transform_1, window_bounds = array<i64: 128, 128>}, {transform_indices = @transform_2, window_bounds = array<i64: 128, 128>}, {pipeline_mode = #tpu.pipeline_mode<synchronous>, transform_indices = @transform_3, window_bounds = array<i64: 128, 8>}, {pipeline_mode = #tpu.pipeline_mode<synchronous>, transform_indices = @transform_4, window_bounds = array<i64: 8, 128>}, {pipeline_mode = #tpu.pipeline_mode<synchronous>, transform_indices = @transform_5, window_bounds = array<i64: 128, 128>}, {pipeline_mode = #tpu.pipeline_mode<synchronous>, transform_indices = @transform_6, window_bounds = array<i64: 128, 128>}, {pipeline_mode = #tpu.pipeline_mode<synchronous>, transform_indices = @transform_7, window_bounds = array<i64: 1, 128>}, {pipeline_mode = #tpu.pipeline_mode<synchronous>, transform_indices = @transform_8, window_bounds = array<i64: 1, 128>}, {transform_indices = @transform_9, window_bounds = array<i64: 128, 128>}]} {
    %c0 = arith.constant 0 : index
    %c0_0 = arith.constant 0 : index
    %0 = vector.load %arg1[%c0, %c0_0] : memref<128x128xf32, #tpu.memory_space<vmem>>, vector<128x128xf32>
    %cst = arith.constant 5.000000e-01 : f32
    %1 = vector.broadcast %cst : f32 to vector<128x128xf32>
    %2 = arith.mulf %1, %0 : vector<128x128xf32>
    %c0_1 = arith.constant 0 : index
    %c0_2 = arith.constant 0 : index
    %3 = vector.load %arg2[%c0_1, %c0_2] : memref<128x128xf32, #tpu.memory_space<vmem>>, vector<128x128xf32>
    %cst_3 = arith.constant 2.500000e-01 : f32
    %4 = vector.broadcast %cst_3 : f32 to vector<128x128xf32>
    %5 = arith.mulf %4, %3 : vector<128x128xf32>
    %6 = arith.addf %2, %5 : vector<128x128xf32>
    %c0_4 = arith.constant 0 : index
    %c0_5 = arith.constant 0 : index
    %7 = vector.load %arg3[%c0_4, %c0_5] : memref<128x128xf32, #tpu.memory_space<vmem>>, vector<128x128xf32>
    %cst_6 = arith.constant 2.500000e-01 : f32
    %8 = vector.broadcast %cst_6 : f32 to vector<128x128xf32>
    %9 = arith.mulf %8, %7 : vector<128x128xf32>
    %10 = arith.addf %6, %9 : vector<128x128xf32>
    %c0_7 = arith.constant 0 : index
    %c0_8 = arith.constant 0 : index
    %11 = vector.load %arg6[%c0_7, %c0_8] : memref<128x128xf32, #tpu.memory_space<vmem>>, vector<128x128xf32>
    %cst_9 = arith.constant dense<0.000000e+00> : vector<128x128xf32>
    %12 = tpu.matmul %10, %11, %cst_9 {dimension_numbers = #tpu.dot_dimension_numbers<[1], [0], [0], [1], [0, 0, 1, 1], [], []>} : vector<128x128xf32>, vector<128x128xf32>, vector<128x128xf32> -> vector<128x128xf32>
    %c0_10 = arith.constant 0 : index
    %c0_11 = arith.constant 0 : index
    %13 = vector.load %arg8[%c0_10, %c0_11] : memref<1x128xf32, #tpu.memory_space<vmem>>, vector<1x128xf32>
    %14 = vector.broadcast %13 : vector<1x128xf32> to vector<128x128xf32>
    %15 = arith.addf %12, %14 : vector<128x128xf32>
    %c0_12 = arith.constant 0 : index
    %c0_13 = arith.constant 0 : index
    %16 = vector.load %arg4[%c0_12, %c0_13] : memref<128x8xf32, #tpu.memory_space<vmem>>, vector<128x8xf32>
    %cst_14 = arith.constant dense<0.000000e+00> : vector<128x8xf32>
    %17 = tpu.matmul %15, %16, %cst_14 {dimension_numbers = #tpu.dot_dimension_numbers<[1], [0], [0], [1], [0, 0, 1, 1], [], []>} : vector<128x128xf32>, vector<128x8xf32>, vector<128x8xf32> -> vector<128x8xf32>
    %cst_15 = arith.constant dense<0xFF800000> : vector<128xf32>
    %18 = vector.multi_reduction <maximumf>, %17, %cst_15 [1] : vector<128x8xf32> to vector<128xf32>
    %19 = vector.shape_cast %18 : vector<128xf32> to vector<128x1xf32>
    %20 = vector.broadcast %19 : vector<128x1xf32> to vector<128x8xf32>
    %21 = arith.subf %17, %20 : vector<128x8xf32>
    %22 = math.exp %21 : vector<128x8xf32>
    %cst_16 = arith.constant dense<0.000000e+00> : vector<128xf32>
    %23 = vector.multi_reduction <add>, %22, %cst_16 [1] : vector<128x8xf32> to vector<128xf32>
    %24 = vector.shape_cast %23 : vector<128xf32> to vector<128x1xf32>
    %25 = tpu.reciprocal %24 {approx = true} : vector<128x1xf32> -> vector<128x1xf32>
    %26 = vector.broadcast %25 : vector<128x1xf32> to vector<128x8xf32>
    %27 = arith.mulf %22, %26 : vector<128x8xf32>
    %c0_17 = arith.constant 0 : index
    %c0_18 = arith.constant 0 : index
    %28 = vector.load %arg5[%c0_17, %c0_18] : memref<8x128xf32, #tpu.memory_space<vmem>>, vector<8x128xf32>
    %cst_19 = arith.constant dense<0.000000e+00> : vector<128x128xf32>
    %29 = tpu.matmul %27, %28, %cst_19 {dimension_numbers = #tpu.dot_dimension_numbers<[1], [0], [0], [1], [0, 0, 1, 1], [], []>} : vector<128x8xf32>, vector<8x128xf32>, vector<128x128xf32> -> vector<128x128xf32>
    %c0_20 = arith.constant 0 : index
    %c0_21 = arith.constant 0 : index
    %30 = vector.load %arg7[%c0_20, %c0_21] : memref<128x128xf32, #tpu.memory_space<vmem>>, vector<128x128xf32>
    %cst_22 = arith.constant dense<0.000000e+00> : vector<128x128xf32>
    %31 = tpu.matmul %29, %30, %cst_22 {dimension_numbers = #tpu.dot_dimension_numbers<[1], [0], [0], [1], [0, 0, 1, 1], [], []>} : vector<128x128xf32>, vector<128x128xf32>, vector<128x128xf32> -> vector<128x128xf32>
    %c0_23 = arith.constant 0 : index
    %c0_24 = arith.constant 0 : index
    %32 = vector.load %arg9[%c0_23, %c0_24] : memref<1x128xf32, #tpu.memory_space<vmem>>, vector<1x128xf32>
    %33 = vector.broadcast %32 : vector<1x128xf32> to vector<128x128xf32>
    %34 = arith.addf %31, %33 : vector<128x128xf32>
    %35 = vector.extract_strided_slice %17 {offsets = [0, 0], sizes = [128, 1], strides = [1, 1]} : vector<128x8xf32> to vector<128x1xf32>
    %36 = arith.cmpf oge, %35, %19 : vector<128x1xf32>
    %cst_25 = arith.constant 0.000000e+00 : f32
    %37 = vector.shape_cast %36 : vector<128x1xi1> to vector<128x1xi1>
    %38 = vector.broadcast %37 : vector<128x1xi1> to vector<128x128xi1>
    %39 = vector.broadcast %cst_25 : f32 to vector<128x128xf32>
    %40 = arith.select %38, %39, %34 : vector<128x128xi1>, vector<128x128xf32>
    %c0_26 = arith.constant 0 : index
    %c0_27 = arith.constant 0 : index
    %41 = vector.load %arg10[%c0_26, %c0_27] : memref<128x128xf32, #tpu.memory_space<vmem>>, vector<128x128xf32>
    tpu.vector_store %arg10[%c0_26, %c0_27], %40 {strides = array<i32>} : memref<128x128xf32, #tpu.memory_space<vmem>>, vector<128x128xf32>,
    return
  }
  func.func @transform_0(%arg0: i32) -> (i32, i32) {
    %c0_i32 = arith.constant 0 : i32
    %c0_i32_0 = arith.constant 0 : i32
    return %arg0, %c0_i32 : i32, i32
  }
  func.func @transform_1(%arg0: i32) -> (i32, i32) {
    %c0_i32 = arith.constant 0 : i32
    %c0_i32_0 = arith.constant 0 : i32
    return %arg0, %c0_i32 : i32, i32
  }
  func.func @transform_2(%arg0: i32) -> (i32, i32) {
    %c0_i32 = arith.constant 0 : i32
    %c0_i32_0 = arith.constant 0 : i32
    return %arg0, %c0_i32 : i32, i32
  }
  func.func @transform_3(%arg0: i32) -> (i32, i32) {
    %c0_i32 = arith.constant 0 : i32
    %c0_i32_0 = arith.constant 0 : i32
    %c0_i32_1 = arith.constant 0 : i32
    return %c0_i32, %c0_i32_0 : i32, i32
  }
  func.func @transform_4(%arg0: i32) -> (i32, i32) {
    %c0_i32 = arith.constant 0 : i32
    %c0_i32_0 = arith.constant 0 : i32
    %c0_i32_1 = arith.constant 0 : i32
    return %c0_i32, %c0_i32_0 : i32, i32
  }
  func.func @transform_5(%arg0: i32) -> (i32, i32) {
    %c0_i32 = arith.constant 0 : i32
    %c0_i32_0 = arith.constant 0 : i32
    %c0_i32_1 = arith.constant 0 : i32
    return %c0_i32, %c0_i32_0 : i32, i32
  }
  func.func @transform_6(%arg0: i32) -> (i32, i32) {
    %c0_i32 = arith.constant 0 : i32
    %c0_i32_0 = arith.constant 0 : i32
    %c0_i32_1 = arith.constant 0 : i32
    return %c0_i32, %c0_i32_0 : i32, i32
  }
  func.func @transform_7(%arg0: i32) -> (i32, i32) {
    %c0_i32 = arith.constant 0 : i32
    %c0_i32_0 = arith.constant 0 : i32
    %c0_i32_1 = arith.constant 0 : i32
    return %c0_i32, %c0_i32_0 : i32, i32
  }
  func.func @transform_8(%arg0: i32) -> (i32, i32) {
    %c0_i32 = arith.constant 0 : i32
    %c0_i32_0 = arith.constant 0 : i32
    %c0_i32_1 = arith.constant 0 : i32
    return %c0_i32, %c0_i32_0 : i32, i32
  }
  func.func @transform_9(%arg0: i32) -> (i32, i32) {
    %c0_i32 = arith.constant 0 : i32
    %c0_i32_0 = arith.constant 0 : i32
    return %arg0, %c0_i32 : i32, i32
  }
}

</mosaic_0001>

<bundles_post_ra>
// kernel: tpu_custom_call.1
= control target key start
LH: loop header
LB: loop body
LE: loop exit
PB: predicated region body
PF: predicated region fallthrough
CT: control target
= control target key end

     0   :  { %14 = vsyncpa [#allocation3], 0  ;;  %s2223_s0 = inlined_call_operand.vmem [shape: f32[128,128], index: 0, kind: input, shape index: {}]   ;;  %s2224_s1 = inlined_call_operand.hbm [shape: f32[128,128], index: 1, kind: input, shape index: {}]   ;;  %s2225_s2 = inlined_call_operand.hbm [shape: f32[128,128], index: 2, kind: input, shape index: {}]   ;;  %s2226_s3 = inlined_call_operand.vmem [shape: f32[128,8], index: 3, kind: input, shape index: {}]   ;;  %s2227_s4 = inlined_call_operand.vmem [shape: f32[8,128], index: 4, kind: input, shape index: {}]   ;;  %s2228_s5 = inlined_call_operand.hbm [shape: f32[128,128], index: 5, kind: input, shape index: {}]   ;;  %s2229_s6 = inlined_call_operand.hbm [shape: f32[128,128], index: 6, kind: input, shape index: {}]   ;;  %s2230_s7 = inlined_call_operand.vmem [shape: f32[1,128], index: 7, kind: input, shape index: {}]   ;;  %s2231_s8 = inlined_call_operand.vmem [shape: f32[1,128], index: 8, kind: input, shape index: {}]   ;;  %s2232_s9 = inlined_call_operand.hbm [shape: f32[128,128], index: 9, kind: output, shape index: {}]  }
   0x1   :  { %15 = vsyncpa [#allocation6], 0 }
   0x2   :  { %16 = vsyncpa [#allocation9], 0 }
   0x3   :  { %17 = vsyncpa [#allocation4], 0  ;;  %s1738_s30 = smov [#allocation5]   ;;  %s1739_s11 = smov [#allocation2]  }
   0x4   :  { %s37_s10 = sshll.u32 %s1738_s30, 4  ;;  %s25_s12 = sshll.u32 %s1739_s11, 4  ;;  %s38_s10 = int_to_ptr.vmem [resolvable:$true] %s37_s10  ;;  %s26_s12 = int_to_ptr.vmem [resolvable:$true] %s25_s12 }
   0x5   :  { %s1638_s13 = scalar_lea.vmem %s38_s10, 2048  ;;  %p1643_p1 = scmp.lt.s32.totalorder %s38_s10, %s38_s10 }
   0x6   :  { %p1639_p0 = scmp.ne.s32.totalorder %s38_s10, %s1638_s13  ;;  %p1644_p2 = scmp.lt.s32.totalorder %s1638_s13, %s1638_s13 }
   0x8   :  { %p1645_p3 = por %p1644_p2, %p1643_p1 }
   0xa   :  { %p1646_p4 = pnand %p1645_p3, %p1639_p0 }
   0xc   :  { %1649 = shalt.err (!%p1646_p4)
}
   0xd   :  { %s1740_s14 = smov 128   ;;  %s1741_s15 = smov 8  }
   0xe   :  { %43 = dma.hbm_to_vmem [thread:$0]  %s2225_s2, 2048, %s38_s10, [#allocation6], %s1740_s14, %s1740_s14, %s1741_s15  }
   0xf   :  { %s1658_s18 = scalar_lea.vmem %s26_s12, 2048  ;;  %p1663_p6 = scmp.lt.s32.totalorder %s26_s12, %s26_s12 }
  0x10   :  { %p1659_p5 = scmp.ne.s32.totalorder %s26_s12, %s1658_s18  ;;  %p1664_p7 = scmp.lt.s32.totalorder %s1658_s18, %s1658_s18 }
  0x12   :  { %p1665_p8 = por %p1664_p7, %p1663_p6 }
  0x14   :  { %p1666_p9 = pnand %p1665_p8, %p1659_p5 }
  0x16   :  { %1669 = shalt.err (!%p1666_p9)
}
  0x17   :  { %31 = dma.hbm_to_vmem [thread:$0]  %s2224_s1, 2048, %s26_s12, [#allocation3], %s1740_s14, %s1740_s14, %s1741_s15  }
  0x18   :  { %s1742_s21 = smov [#allocation7]   ;;  %s1743_s23 = smov [#allocation8]  }
  0x19   :  { %s53_s22 = sshll.u32 %s1742_s21, 4  ;;  %s65_s24 = sshll.u32 %s1743_s23, 4  ;;  %s54_s22 = int_to_ptr.vmem [resolvable:$true] %s53_s22  ;;  %s66_s24 = int_to_ptr.vmem [resolvable:$true] %s65_s24 }
  0x1a   :  { %s1678_s2 = scalar_lea.vmem %s54_s22, 2048  ;;  %p1683_p11 = scmp.lt.s32.totalorder %s54_s22, %s54_s22 }
  0x1b   :  { %p1679_p10 = scmp.ne.s32.totalorder %s54_s22, %s1678_s2  ;;  %p1684_p12 = scmp.lt.s32.totalorder %s1678_s2, %s1678_s2 }
  0x1d   :  { %p1685_p13 = por %p1684_p12, %p1683_p11 }
  0x1f   :  { %p1686_p0 = pnand %p1685_p13, %p1679_p10 }
  0x21   :  { %1689 = shalt.err (!%p1686_p0)
}
  0x22   :  { %59 = dma.hbm_to_vmem [thread:$0]  %s2228_s5, 2048, %s54_s22, [#allocation6], %s1740_s14, %s1740_s14, %s1741_s15  }
  0x23   :  { %s1698_s1 = scalar_lea.vmem %s66_s24, 2048  ;;  %p1703_p2 = scmp.lt.s32.totalorder %s66_s24, %s66_s24 }
  0x24   :  { %p1699_p1 = scmp.ne.s32.totalorder %s66_s24, %s1698_s1  ;;  %p1704_p3 = scmp.lt.s32.totalorder %s1698_s1, %s1698_s1 }
  0x26   :  { %p1705_p4 = por %p1704_p3, %p1703_p2 }
  0x28   :  { %p1706_p5 = pnand %p1705_p4, %p1699_p1 }
  0x2a   :  { %1709 = shalt.err (!%p1706_p5)
}
  0x2b   :  { %71 = dma.hbm_to_vmem [thread:$0]  %s2229_s6, 2048, %s66_s24, [#allocation9], %s1740_s14, %s1740_s14, %s1741_s15  }
  0x2c   :  { %1730 = dma.done.wait [#allocation3], 2048  }
  0x2d   :  { %1731 = vsyncadd [#allocation3], 4294965248 }
  0x2e   :  { %1732 = dma.done.wait [#allocation6], 4096  }
  0x2f   :  { %1733 = vsyncadd [#allocation6], 4294963200 }
  0x30   :  { %1734 = dma.done.wait [#allocation9], 2048  }
  0x31   :  { %1735 = vsyncadd [#allocation9], 4294965248  ;;  %v231_v0 = vld [vmem:[#allocation7 + $0x78] sm:$0xff]  ;;  %v230_v1 = vld [vmem:[#allocation7 + $0x70] sm:$0xff]  ;;  %vm545_vm0 = vcmask 64512  }
  0x32   :  { %1362 = vmatprep.subr.mxu0 %v231_v0  ;;  %v229_v2 = vld [vmem:[#allocation7 + $0x68] sm:$0xff]  ;;  %v228_v3 = vld [vmem:[#allocation7 + $0x60] sm:$0xff]  ;;  %v227_v6 = vld [vmem:[#allocation7 + $0x58] sm:$0xff] }
  0x33   :  { %1363 = vmatpush3.msra.mxu0 %v231_v0  ;;  %v88_v4 = vld [vmem:[%s2223_s0] sm:$0xff]  ;;  %v226_v11 = vld [vmem:[#allocation7 + $0x50] sm:$0xff]  ;;  %v225_v13 = vld [vmem:[#allocation7 + $0x48] sm:$0xff] }
  0x34   :  { %1364 = vmatprep.subr.mxu0 %v230_v1  ;;  %v120_v5 = vld [vmem:[#allocation2] sm:$0xff]  ;;  %v104_v7 = vmul.f32 0.5, %v88_v4  ;;  %v223_v16 = vld [vmem:[#allocation7 + $0x38] sm:$0xff]  ;;  %v222_v17 = vld [vmem:[#allocation7 + $0x30] sm:$0xff] }
  0x35   :  { %1365 = vmatpush3.msra.mxu0 %v230_v1  ;;  %v136_v8 = vmul.f32 0.25, %v120_v5  ;;  %v168_v9 = vld [vmem:[#allocation5] sm:$0xff]  ;;  %v221_v18 = vld [vmem:[#allocation7 + $0x28] sm:$0xff]  ;;  %v90_v21 = vld [vmem:[%s2223_s0 + $0x10] sm:$0xff] }
  0x36   :  { %1366 = vmatprep.subr.mxu0 %v229_v2  ;;  %v184_v10 = vmul.f32 0.25, %v168_v9  ;;  %v224_v15 = vld [vmem:[#allocation7 + $0x40] sm:$0xff]  ;;  %v89_v19 = vld [vmem:[%s2223_s0 + $0x8] sm:$0xff]  ;;  %v122_v22 = vld [vmem:[#allocation2 + $0x10] sm:$0xff]  ;;  %v106_v32 = vmul.f32 0.5, %v90_v21 }
  0x37   :  { %1367 = vmatpush3.msra.mxu0 %v229_v2  ;;  %v152_v12 = vadd.f32 %v136_v8, %v104_v7  ;;  %v121_v20 = vld [vmem:[#allocation2 + $0x8] sm:$0xff]  ;;  %v220_v23 = vld [vmem:[#allocation7 + $0x20] sm:$0xff]  ;;  %v91_v24 = vld [vmem:[%s2223_s0 + $0x18] sm:$0xff]  ;;  %v105_v25 = vmul.f32 0.5, %v89_v19  ;;  %v138_v33 = vmul.f32 0.25, %v122_v22 }
  0x38   :  { %1368 = vmatprep.subr.mxu0 %v228_v3  ;;  %v137_v26 = vmul.f32 0.25, %v121_v20  ;;  %v123_v27 = vld [vmem:[#allocation2 + $0x18] sm:$0xff]  ;;  %v398_v29 = vld [vmem:[%s2226_s3 + $0x70] sm:$0xff]  ;;  %v169_v31 = vld [vmem:[#allocation5 + $0x8] sm:$0xff]  ;;  %v107_v39 = vmul.f32 0.5, %v91_v24 }
  0x39   :  { %1369 = vmatpush3.msra.mxu0 %v228_v3  ;;  %v200_v14 = vadd.f32 %v184_v10, %v152_v12  ;;  %v399_v28 = vld [vmem:[%s2226_s3 + $0x78] sm:$0xff]  ;;  %v170_v34 = vld [vmem:[#allocation5 + $0x10] sm:$0xff]  ;;  %v92_v35 = vld [vmem:[%s2223_s0 + $0x20] sm:$0xff]  ;;  %v139_v40 = vmul.f32 0.25, %v123_v27  ;;  %v185_v43 = vmul.f32 0.25, %v169_v31  ;;  %v154_v46 = vadd.f32 %v138_v33, %v106_v32 }
  0x3a   :  { %1370 = vmatprep.subr.mxu0 %v227_v6  ;;  %v219_v30 = vld [vmem:[#allocation7 + $0x18] sm:$0xff]  ;;  %1418 = vmatprep.subr.mxu1 %v399_v28  ;;  %v124_v36 = vld [vmem:[#allocation2 + $0x20] sm:$0xff]  ;;  %v397_v37 = vld [vmem:[%s2226_s3 + $0x68] sm:$0xff]  ;;  %v153_v42 = vadd.f32 %v137_v26, %v105_v25  ;;  %v186_v47 = vmul.f32 0.25, %v170_v34  ;;  %v108_v48 = vmul.f32 0.5, %v92_v35 }
  0x3b   :  { %1371 = vmatpush3.msra.mxu0 %v227_v6  ;;  %1394 = vmatprep.mubr.f32.mxu0 %v200_v14  ;;  %v218_v38 = vld [vmem:[#allocation7 + $0x10] sm:$0xff]  ;;  %v217_v41 = vld [vmem:[#allocation7 + $0x8] sm:$0xff]  ;;  %v171_v44 = vld [vmem:[#allocation5 + $0x18] sm:$0xff]  ;;  %v140_v49 = vmul.f32 0.25, %v124_v36  ;;  %v155_v57 = vadd.f32 %v139_v40, %v107_v39 }
  0x3c   :  { %1372 = vmatprep.subr.mxu0 %v226_v11  ;;  %1419 = vmatpush3.msra.mxu1 %v399_v28  ;;  %v396_v45 = vld [vmem:[%s2226_s3 + $0x60] sm:$0xff]  ;;  %v93_v51 = vld [vmem:[%s2223_s0 + $0x28] sm:$0xff]  ;;  %v94_v53 = vld [vmem:[%s2223_s0 + $0x30] sm:$0xff]  ;;  %v187_v58 = vmul.f32 0.25, %v171_v44  ;;  %v201_v59 = vadd.f32 %v185_v43, %v153_v42  ;;  %v202_v1 = vadd.f32 %v186_v47, %v154_v46 }
  0x3d   :  { %1373 = vmatpush3.msra.mxu0 %v226_v11  ;;  %1420 = vmatprep.subr.mxu1 %v398_v29  ;;  %v172_v50 = vld [vmem:[#allocation5 + $0x20] sm:$0xff]  ;;  %v125_v52 = vld [vmem:[#allocation2 + $0x28] sm:$0xff]  ;;  %v126_v54 = vld [vmem:[#allocation2 + $0x30] sm:$0xff]  ;;  %v109_v61 = vmul.f32 0.5, %v93_v51  ;;  %v156_v2 = vadd.f32 %v140_v49, %v108_v48  ;;  %v110_v3 = vmul.f32 0.5, %v94_v53 }
  0x3e   :  { %1374 = vmatprep.subr.mxu0 %v225_v13  ;;  %1421 = vmatpush3.msra.mxu1 %v398_v29  ;;  %v395_v55 = vld [vmem:[%s2226_s3 + $0x58] sm:$0xff]  ;;  %v216_v56 = vld [vmem:[#allocation7] sm:$0xff]  ;;  %v188_v60 = vmul.f32 0.25, %v172_v50  ;;  %v141_v62 = vmul.f32 0.25, %v125_v52  ;;  %v173_v63 = vld [vmem:[#allocation5 + $0x28] sm:$0xff]  ;;  %v142_v4 = vmul.f32 0.25, %v126_v54  ;;  %v203_v11 = vadd.f32 %v187_v58, %v155_v57 }
  0x3f   :  { %1375 = vmatpush3.msra.mxu0 %v225_v13  ;;  %1422 = vmatprep.subr.mxu1 %v397_v37  ;;  %v394_v0 = vld [vmem:[%s2226_s3 + $0x50] sm:$0xff]  ;;  %v95_v6 = vld [vmem:[%s2223_s0 + $0x38] sm:$0xff]  ;;  %v96_v8 = vld [vmem:[%s2223_s0 + $0x40] sm:$0xff]  ;;  %v189_v12 = vmul.f32 0.25, %v173_v63 }
  0x40   :  { %1376 = vmatprep.subr.mxu0 %v224_v15  ;;  %1423 = vmatpush3.msra.mxu1 %v397_v37  ;;  %v174_v5 = vld [vmem:[#allocation5 + $0x30] sm:$0xff]  ;;  %v127_v7 = vld [vmem:[#allocation2 + $0x38] sm:$0xff]  ;;  %v128_v9 = vld [vmem:[#allocation2 + $0x40] sm:$0xff]  ;;  %v157_v13 = vadd.f32 %v141_v62, %v109_v61  ;;  %v204_v20 = vadd.f32 %v188_v60, %v156_v2  ;;  %v158_v21 = vadd.f32 %v142_v4, %v110_v3 }
  0x41   :  { %1377 = vmatpush3.msra.mxu0 %v224_v15  ;;  %1424 = vmatprep.subr.mxu1 %v396_v45  ;;  %v393_v10 = vld [vmem:[%s2226_s3 + $0x48] sm:$0xff]  ;;  %v190_v14 = vmul.f32 0.25, %v174_v5  ;;  %v111_v15 = vmul.f32 0.5, %v95_v6  ;;  %v392_v19 = vld [vmem:[%s2226_s3 + $0x40] sm:$0xff]  ;;  %v175_v22 = vld [vmem:[#allocation5 + $0x38] sm:$0xff]  ;;  %v144_v24 = vmul.f32 0.25, %v128_v9 }
  0x42   :  { %1378 = vmatprep.subr.mxu0 %v223_v16  ;;  %1425 = vmatpush3.msra.mxu1 %v396_v45  ;;  %v176_v25 = vld [vmem:[#allocation5 + $0x40] sm:$0xff]  ;;  %v98_v26 = vld [vmem:[%s2223_s0 + $0x50] sm:$0xff]  ;;  %v391_v28 = vld [vmem:[%s2226_s3 + $0x38] sm:$0xff]  ;;  %v205_v31 = vadd.f32 %v189_v12, %v157_v13  ;;  %v191_v33 = vmul.f32 0.25, %v175_v22 }
  0x43   :  { %1379 = vmatpush3.msra.mxu0 %v223_v16  ;;  %1426 = vmatprep.subr.mxu1 %v395_v55  ;;  %v143_v16 = vmul.f32 0.25, %v127_v7  ;;  %v130_v27 = vld [vmem:[#allocation2 + $0x50] sm:$0xff]  ;;  %v192_v34 = vmul.f32 0.25, %v176_v25  ;;  %v177_v35 = vld [vmem:[#allocation5 + $0x48] sm:$0xff]  ;;  %v206_v37 = vadd.f32 %v190_v14, %v158_v21  ;;  %v114_v39 = vmul.f32 0.5, %v98_v26  ;;  %v99_v42 = vld [vmem:[%s2223_s0 + $0x58] sm:$0xff] }
  0x44   :  { %1380 = vmatprep.subr.mxu0 %v222_v17  ;;  %1427 = vmatpush3.msra.mxu1 %v395_v55  ;;  %v390_v36 = vld [vmem:[%s2226_s3 + $0x30] sm:$0xff]  ;;  %v146_v40 = vmul.f32 0.25, %v130_v27  ;;  %v131_v43 = vld [vmem:[#allocation2 + $0x58] sm:$0xff]  ;;  %v100_v44 = vld [vmem:[%s2223_s0 + $0x60] sm:$0xff]  ;;  %v193_v48 = vmul.f32 0.25, %v177_v35  ;;  %v115_v51 = vmul.f32 0.5, %v99_v42 }
  0x45   :  { %1381 = vmatpush3.msra.mxu0 %v222_v17  ;;  %1428 = vmatprep.subr.mxu1 %v394_v0  ;;  %v97_v17 = vld [vmem:[%s2223_s0 + $0x48] sm:$0xff]  ;;  %v159_v32 = vadd.f32 %v143_v16, %v111_v15  ;;  %v132_v45 = vld [vmem:[#allocation2 + $0x60] sm:$0xff]  ;;  %v147_v52 = vmul.f32 0.25, %v131_v43  ;;  %v179_v53 = vld [vmem:[#allocation5 + $0x58] sm:$0xff]  ;;  %v116_v57 = vmul.f32 0.5, %v100_v44 }
  0x46   :  { %1382 = vmatprep.subr.mxu0 %v221_v18  ;;  %1429 = vmatpush3.msra.mxu1 %v394_v0  ;;  %v113_v29 = vmul.f32 0.5, %v97_v17  ;;  %v389_v46 = vld [vmem:[%s2226_s3 + $0x28] sm:$0xff]  ;;  %v388_v54 = vld [vmem:[%s2226_s3 + $0x20] sm:$0xff]  ;;  %v148_v58 = vmul.f32 0.25, %v132_v45  ;;  %v102_v62 = vld [vmem:[%s2223_s0 + $0x70] sm:$0xff]  ;;  %v195_v2 = vmul.f32 0.25, %v179_v53 }
  0x47   :  { %1383 = vmatpush3.msra.mxu0 %v221_v18  ;;  %v129_v18 = vld [vmem:[#allocation2 + $0x48] sm:$0xff]  ;;  %1430 = vmatprep.subr.mxu1 %v393_v10  ;;  %v207_v49 = vadd.f32 %v191_v33, %v159_v32  ;;  %v134_v63 = vld [vmem:[#allocation2 + $0x70] sm:$0xff]  ;;  %v387_v0 = vld [vmem:[%s2226_s3 + $0x18] sm:$0xff]  ;;  %v163_v3 = vadd.f32 %v147_v52, %v115_v51 }
  0x48   :  { %1384 = vmatprep.subr.mxu0 %v220_v23  ;;  %1431 = vmatpush3.msra.mxu1 %v393_v10  ;;  %v101_v60 = vld [vmem:[%s2223_s0 + $0x68] sm:$0xff]  ;;  %v164_v9 = vadd.f32 %v148_v58, %v116_v57  ;;  %v118_v10 = vmul.f32 0.5, %v102_v62  ;;  %v103_v12 = vld [vmem:[%s2223_s0 + $0x78] sm:$0xff]  ;;  %v182_v14 = vld [vmem:[#allocation5 + $0x70] sm:$0xff] }
  0x49   :  { %1385 = vmatpush3.msra.mxu0 %v220_v23  ;;  %v112_v23 = vmul.f32 0.5, %v96_v8  ;;  %1432 = vmatprep.subr.mxu1 %v392_v19  ;;  %v133_v61 = vld [vmem:[#allocation2 + $0x68] sm:$0xff]  ;;  %v117_v5 = vmul.f32 0.5, %v101_v60  ;;  %v135_v13 = vld [vmem:[#allocation2 + $0x78] sm:$0xff]  ;;  %v211_v16 = vadd.f32 %v195_v2, %v163_v3  ;;  %v198_v22 = vmul.f32 0.25, %v182_v14 }
  0x4a   :  { %1386 = vmatprep.subr.mxu0 %v219_v30  ;;  %1433 = vmatpush3.msra.mxu1 %v392_v19  ;;  %v149_v6 = vmul.f32 0.25, %v133_v61  ;;  %v181_v7 = vld [vmem:[#allocation5 + $0x68] sm:$0xff]  ;;  %v151_v19 = vmul.f32 0.25, %v135_v13  ;;  %v1231_v33 = vld [vmem:[%s2230_s7] ss:$0 sm:$0xff] }
  0x4b   :  { %1387 = vmatpush3.msra.mxu0 %v219_v30  ;;  %v145_v30 = vmul.f32 0.25, %v129_v18  ;;  %1434 = vmatprep.subr.mxu1 %v391_v28  ;;  %v197_v15 = vmul.f32 0.25, %v181_v7  ;;  %v119_v18 = vmul.f32 0.5, %v103_v12 }
  0x4c   :  { %1388 = vmatprep.subr.mxu0 %v218_v38  ;;  %1435 = vmatpush3.msra.mxu1 %v391_v28  ;;  %v165_v17 = vadd.f32 %v149_v6, %v117_v5 }
  0x4d   :  { %1389 = vmatpush3.msra.mxu0 %v218_v38  ;;  %v160_v38 = vadd.f32 %v144_v24, %v112_v23  ;;  %v161_v47 = vadd.f32 %v145_v30, %v113_v29  ;;  %1436 = vmatprep.subr.mxu1 %v390_v36  ;;  %v183_v23 = vld [vmem:[#allocation5 + $0x78] sm:$0xff]  ;;  %v167_v25 = vadd.f32 %v151_v19, %v119_v18  ;;  %v386_v29 = vld [vmem:[%s2226_s3 + $0x10] sm:$0xff]  ;;  %v385_v30 = vld [vmem:[%s2226_s3 + $0x8] sm:$0xff] }
  0x4e   :  { %1390 = vmatprep.subr.mxu0 %v217_v41  ;;  %1437 = vmatpush3.msra.mxu1 %v390_v36  ;;  %v213_v24 = vadd.f32 %v197_v15, %v165_v17  ;;  %v199_v26 = vmul.f32 0.25, %v183_v23  ;;  %v1744_v17 = vmov 0  }
  0x4f   :  { %1391 = vmatpush3.msra.mxu0 %v217_v41  ;;  %v178_v41 = vld [vmem:[#allocation5 + $0x50] sm:$0xff]  ;;  %v208_v55 = vadd.f32 %v192_v34, %v160_v38  ;;  %1438 = vmatprep.subr.mxu1 %v389_v46 }
  0x50   :  { %1392 = vmatprep.subr.mxu0 %v216_v56  ;;  %v194_v50 = vmul.f32 0.25, %v178_v41  ;;  %1439 = vmatpush3.msra.mxu1 %v389_v46  ;;  %v215_v28 = vadd.f32 %v199_v26, %v167_v25 }
  0x51   :  { %1393 = vmatpush3.msra.mxu0 %v216_v56  ;;  %v162_v56 = vadd.f32 %v146_v40, %v114_v39  ;;  %1440 = vmatprep.subr.mxu1 %v388_v54 }
  0x52   :  { %1395 = vmatmul.mubr.f32.vlgmr.msra.gmra.mxu0 %v201_v59  ;;  %v180_v59 = vld [vmem:[#allocation5 + $0x60] sm:$0xff]  ;;  %1441 = vmatpush3.msra.mxu1 %v388_v54 }
  0x53   :  { %1397 = vmatprep.mubr.f32.mxu0 %v202_v1  ;;  %v209_v1 = vadd.f32 %v193_v48, %v161_v47  ;;  %v196_v4 = vmul.f32 0.25, %v180_v59  ;;  %v210_v8 = vadd.f32 %v194_v50, %v162_v56  ;;  %1442 = vmatprep.subr.mxu1 %v387_v0 }
  0x54   :  { %1443 = vmatpush3.msra.mxu1 %v387_v0  ;;  %1565 = vset.pattern.permute.xlu1 %v1744_v17 }
  0x55   :  { %1444 = vmatprep.subr.mxu1 %v386_v29  ;;  %1564 = vset.pattern.permute.xlu0 %v1744_v17 }
  0x56   :  { %1398 = vmatmul.mubr.f32.gmra.mxu0 %v203_v11  ;;  %v150_v11 = vmul.f32 0.25, %v134_v63  ;;  %1445 = vmatpush3.msra.mxu1 %v386_v29 }
  0x57   :  { %1400 = vmatprep.mubr.f32.mxu0 %v204_v20  ;;  %v212_v20 = vadd.f32 %v196_v4, %v164_v9  ;;  %1446 = vmatprep.subr.mxu1 %v385_v30 }
  0x58   :  { %v166_v21 = vadd.f32 %v150_v11, %v118_v10  ;;  %1447 = vmatpush3.msra.mxu1 %v385_v30 }
  0x5a   :  { %1401 = vmatmul.mubr.f32.gmra.mxu0 %v205_v31  ;;  %v214_v27 = vadd.f32 %v198_v22, %v166_v21  ;;  %v384_v31 = vld [vmem:[%s2226_s3] sm:$0xff] }
  0x5b   :  { %1403 = vmatprep.mubr.f32.mxu0 %v206_v37  ;;  %1448 = vmatprep.subr.mxu1 %v384_v31 }
  0x5c   :  { %1449 = vmatpush3.msra.mxu1 %v384_v31 }
  0x5e   :  { %1404 = vmatmul.mubr.f32.gmra.mxu0 %v207_v49 }
  0x5f   :  { %1406 = vmatprep.mubr.f32.mxu0 %v208_v55 }
  0x62   :  { %1407 = vmatmul.mubr.f32.gmra.mxu0 %v209_v1 }
  0x63   :  { %1409 = vmatprep.mubr.f32.mxu0 %v210_v8 }
  0x66   :  { %1410 = vmatmul.mubr.f32.gmra.mxu0 %v211_v16 }
  0x67   :  { %1412 = vmatprep.mubr.f32.mxu0 %v212_v20 }
  0x6a   :  { %1413 = vmatmul.mubr.f32.gmra.mxu0 %v213_v24 }
  0x6b   :  { %1415 = vmatprep.mubr.f32.mxu0 %v214_v27 }
  0x6e   :  { %1416 = vmatmul.mubr.f32.gmra.mxu0 %v215_v28 }
 0x112   :  { %v1396_v32 = vpop.f32.mrf.mxu0 }
 0x113   :  { %v311_v36 = vadd.f32 %v1396_v32, %v1231_v33 }
 0x114   :  { %v305_v34 = vpop.f32.mrf.mxu0 }
 0x115   :  { %v306_v35 = vadd.f32 %v1231_v33, %v305_v34  ;;  %v722_v34 = vld [vmem:[%s2227_s4] sm:$0xff] }
 0x116   :  { %v1399_v37 = vpop.f32.mrf.mxu0  ;;  %1474 = vmatprep.subr.mxu0 %v722_v34 }
 0x117   :  { %1450 = vmatprep.mubr.f32.mxu1 %v306_v35  ;;  %v321_v40 = vadd.f32 %v1399_v37, %v1231_v33  ;;  %1475 = vmatpush3.msra.mxu0 %v722_v34 }
 0x118   :  { %v315_v38 = vpop.f32.mrf.mxu0  ;;  %1451 = vmatmul.mubr.f32.vlgmr.msra.gmra.mxu1 %v311_v36 }
 0x119   :  { %v316_v39 = vadd.f32 %v1231_v33, %v315_v38 }
 0x11a   :  { %v1402_v41 = vpop.f32.mrf.mxu0 }
 0x11b   :  { %1453 = vmatprep.mubr.f32.mxu1 %v316_v39  ;;  %v331_v42 = vadd.f32 %v1402_v41, %v1231_v33 }
 0x11c   :  { %v325_v43 = vpop.f32.mrf.mxu0  ;;  %1454 = vmatmul.mubr.f32.gmra.mxu1 %v321_v40 }
 0x11d   :  { %v326_v44 = vadd.f32 %v1231_v33, %v325_v43 }
 0x11e   :  { %v1405_v45 = vpop.f32.mrf.mxu0 }
 0x11f   :  { %1456 = vmatprep.mubr.f32.mxu1 %v326_v44  ;;  %v341_v46 = vadd.f32 %v1405_v45, %v1231_v33 }
 0x120   :  { %v335_v47 = vpop.f32.mrf.mxu0  ;;  %1457 = vmatmul.mubr.f32.gmra.mxu1 %v331_v42 }
 0x121   :  { %v336_v48 = vadd.f32 %v1231_v33, %v335_v47 }
 0x122   :  { %v1408_v49 = vpop.f32.mrf.mxu0 }
 0x123   :  { %1459 = vmatprep.mubr.f32.mxu1 %v336_v48  ;;  %v351_v50 = vadd.f32 %v1408_v49, %v1231_v33 }
 0x124   :  { %v345_v51 = vpop.f32.mrf.mxu0  ;;  %1460 = vmatmul.mubr.f32.gmra.mxu1 %v341_v46 }
 0x125   :  { %v346_v52 = vadd.f32 %v1231_v33, %v345_v51 }
 0x126   :  { %v1411_v53 = vpop.f32.mrf.mxu0 }
 0x127   :  { %1462 = vmatprep.mubr.f32.mxu1 %v346_v52  ;;  %v361_v54 = vadd.f32 %v1411_v53, %v1231_v33 }
 0x128   :  { %v355_v55 = vpop.f32.mrf.mxu0  ;;  %1463 = vmatmul.mubr.f32.gmra.mxu1 %v351_v50 }
 0x129   :  { %v356_v56 = vadd.f32 %v1231_v33, %v355_v55 }
 0x12a   :  { %v1414_v57 = vpop.f32.mrf.mxu0 }
 0x12b   :  { %1465 = vmatprep.mubr.f32.mxu1 %v356_v56  ;;  %v371_v58 = vadd.f32 %v1414_v57, %v1231_v33 }
 0x12c   :  { %v365_v59 = vpop.f32.mrf.mxu0  ;;  %1466 = vmatmul.mubr.f32.gmra.mxu1 %v361_v54 }
 0x12d   :  { %v366_v60 = vadd.f32 %v1231_v33, %v365_v59 }
 0x12e   :  { %v1417_v61 = vpop.f32.mrf.mxu0 }
 0x12f   :  { %1468 = vmatprep.mubr.f32.mxu1 %v366_v60  ;;  %v381_v62 = vadd.f32 %v1417_v61, %v1231_v33 }
 0x130   :  { %v375_v63 = vpop.f32.mrf.mxu0  ;;  %1469 = vmatmul.mubr.f32.gmra.mxu1 %v371_v58 }
 0x131   :  { %v376_v0 = vadd.f32 %v1231_v33, %v375_v63 }
 0x133   :  { %1471 = vmatprep.mubr.f32.mxu1 %v376_v0 }
 0x134   :  { %1472 = vmatmul.mubr.f32.gmra.mxu1 %v381_v62 }
 0x1d8   :  { %v1919_v1 = vpop.f32.mrf.mxu1 }
 0x1d9   :  { %v549_v6 = vsel %vm545_vm0, %v1919_v1, -inf }
 0x1da   :  { %v1921_v2 = vpop.f32.mrf.mxu1 }
 0x1db   :  { %v546_v3 = vsel %vm545_vm0, %v1921_v2, -inf }
 0x1dc   :  { %547 = vmax.xlane.f32.xlu0 %v546_v3  ;;  %v1925_v4 = vpop.f32.mrf.mxu1 }
 0x1dd   :  { %v555_v10 = vsel %vm545_vm0, %v1925_v4, -inf }
 0x1de   :  { %v1927_v5 = vpop.f32.mrf.mxu1 }
 0x1df   :  { %v552_v7 = vsel %vm545_vm0, %v1927_v5, -inf }
 0x1e0   :  { %550 = vmax.xlane.f32.xlu0 %v549_v6  ;;  %553 = vmax.xlane.f32.xlu1 %v552_v7  ;;  %v1933_v8 = vpop.f32.mrf.mxu1 }
 0x1e1   :  { %v561_v14 = vsel %vm545_vm0, %v1933_v8, -inf }
 0x1e2   :  { %v1935_v9 = vpop.f32.mrf.mxu1 }
 0x1e3   :  { %v558_v11 = vsel %vm545_vm0, %v1935_v9, -inf }
 0x1e4   :  { %556 = vmax.xlane.f32.xlu1 %v555_v10  ;;  %559 = vmax.xlane.f32.xlu0 %v558_v11  ;;  %v1941_v12 = vpop.f32.mrf.mxu1 }
 0x1e5   :  { %v567_v19 = vsel %vm545_vm0, %v1941_v12, -inf }
 0x1e6   :  { %v1943_v13 = vpop.f32.mrf.mxu1 }
 0x1e7   :  { %v564_v15 = vsel %vm545_vm0, %v1943_v13, -inf }
 0x1e8   :  { %562 = vmax.xlane.f32.xlu1 %v561_v14  ;;  %565 = vmax.xlane.f32.xlu0 %v564_v15  ;;  %v1949_v16 = vpop.f32.mrf.mxu1 }
 0x1e9   :  { %v573_v23 = vsel %vm545_vm0, %v1949_v16, -inf }
 0x1ea   :  { %v1953_v18 = vpop.f32.mrf.mxu1 }
 0x1eb   :  { %v570_v20 = vsel %vm545_vm0, %v1953_v18, -inf }
 0x1ec   :  { %568 = vmax.xlane.f32.xlu1 %v567_v19  ;;  %571 = vmax.xlane.f32.xlu0 %v570_v20  ;;  %v1959_v21 = vpop.f32.mrf.mxu1 }
 0x1ed   :  { %v579_v27 = vsel %vm545_vm0, %v1959_v21, -inf }
 0x1ee   :  { %v1961_v22 = vpop.f32.mrf.mxu1 }
 0x1ef   :  { %v576_v24 = vsel %vm545_vm0, %v1961_v22, -inf }
 0x1f0   :  { %574 = vmax.xlane.f32.xlu1 %v573_v23  ;;  %577 = vmax.xlane.f32.xlu0 %v576_v24  ;;  %v1967_v25 = vpop.f32.mrf.mxu1 }
 0x1f1   :  { %v585_v31 = vsel %vm545_vm0, %v1967_v25, -inf }
 0x1f2   :  { %v1969_v26 = vpop.f32.mrf.mxu1 }
 0x1f3   :  { %v582_v28 = vsel %vm545_vm0, %v1969_v26, -inf }
 0x1f4   :  { %580 = vmax.xlane.f32.xlu1 %v579_v27  ;;  %583 = vmax.xlane.f32.xlu0 %v582_v28  ;;  %v1975_v29 = vpop.f32.mrf.mxu1 }
 0x1f5   :  { %v591_v33 = vsel %vm545_vm0, %v1975_v29, -inf }
 0x1f6   :  { %v1977_v30 = vpop.f32.mrf.mxu1 }
 0x1f7   :  { %v588_v32 = vsel %vm545_vm0, %v1977_v30, -inf }
 0x1f8   :  { %586 = vmax.xlane.f32.xlu1 %v585_v31  ;;  %589 = vmax.xlane.f32.xlu0 %v588_v32 }
 0x1fc   :  { %592 = vmax.xlane.f32.xlu1 %v591_v33 }
 0x265   :  { %v1988_v35 = vpop.xlane.xlu0 %547 }
 0x266   :  { %v594_v36 = vsub.f32 %v1921_v2, %v1988_v35  ;;  %vm1084_vm2 = vcmp.ge.f32.partialorder %v1921_v2, %v1988_v35  ;;  %v930_v35 = vld [vmem:[#allocation8 + $0x70] sm:$0xff] }
 0x268   :  { %v610_v37 = vmul.f32 1.442695, %v594_v36 }
 0x269   :  { %v1992_v38 = vpop.xlane.xlu0 %550  ;;  %v1994_v39 = vpop.xlane.xlu1 %553 }
 0x26a   :  { %1566 = vpow2.f32 %v610_v37  ;;  %v595_v40 = vsub.f32 %v1919_v1, %v1992_v38  ;;  %v596_v41 = vsub.f32 %v1927_v5, %v1994_v39  ;;  %vm1085_vm1 = vcmp.ge.f32.partialorder %v1919_v1, %v1992_v38 }
 0x26b   :  { %vm1086_vm3 = vcmp.ge.f32.partialorder %v1927_v5, %v1994_v39  ;;  %v928_v39 = vld [vmem:[#allocation8 + $0x60] sm:$0xff] }
 0x26c   :  { %v612_v42 = vmul.f32 1.442695, %v595_v40  ;;  %v614_v43 = vmul.f32 1.442695, %v596_v41 }
 0x26d   :  { %v2000_v44 = vpop.xlane.xlu1 %556  ;;  %v2002_v45 = vpop.xlane.xlu0 %559 }
 0x26e   :  { %1568 = vpow2.f32 %v612_v42  ;;  %v597_v46 = vsub.f32 %v1925_v4, %v2000_v44  ;;  %v598_v47 = vsub.f32 %v1935_v9, %v2002_v45  ;;  %vm1087_vm5 = vcmp.ge.f32.partialorder %v1925_v4, %v2000_v44  ;;  %v926_v44 = vld [vmem:[#allocation8 + $0x50] sm:$0xff] }
 0x26f   :  { %1570 = vpow2.f32 %v614_v43  ;;  %v1103_v2 = vsel %vm1087_vm5, 1, %v1744_v17  ;;  %vm1088_vm7 = vcmp.ge.f32.partialorder %v1935_v9, %v2002_v45  ;;  %v924_v45 = vld [vmem:[#allocation8 + $0x40] sm:$0xff] }
 0x270   :  { %v616_v48 = vmul.f32 1.442695, %v597_v46  ;;  %v618_v49 = vmul.f32 1.442695, %v598_v47  ;;  %v1104_v4 = vsel %vm1088_vm7, 1, %v1744_v17 }
 0x271   :  { %v2008_v50 = vpop.xlane.xlu1 %562  ;;  %v2010_v51 = vpop.xlane.xlu0 %565 }
 0x272   :  { %1572 = vpow2.f32 %v616_v48  ;;  %v599_v52 = vsub.f32 %v1933_v8, %v2008_v50  ;;  %v600_v53 = vsub.f32 %v1943_v13, %v2010_v51  ;;  %vm1089_vm9 = vcmp.ge.f32.partialorder %v1933_v8, %v2008_v50  ;;  %v922_v50 = vld [vmem:[#allocation8 + $0x30] sm:$0xff] }
 0x273   :  { %1574 = vpow2.f32 %v618_v49  ;;  %v1105_v9 = vsel %vm1089_vm9, 1, %v1744_v17  ;;  %vm1090_vm11 = vcmp.ge.f32.partialorder %v1943_v13, %v2010_v51  ;;  %v921_v51 = vld [vmem:[#allocation8 + $0x28] sm:$0xff] }
 0x274   :  { %v620_v54 = vmul.f32 1.442695, %v599_v52  ;;  %v622_v55 = vmul.f32 1.442695, %v600_v53 }
 0x275   :  { %v2016_v56 = vpop.xlane.xlu1 %568  ;;  %v2018_v57 = vpop.xlane.xlu0 %571 }
 0x276   :  { %1576 = vpow2.f32 %v620_v54  ;;  %v601_v58 = vsub.f32 %v1941_v12, %v2016_v56  ;;  %v602_v59 = vsub.f32 %v1953_v18, %v2018_v57  ;;  %vm1091_vm12 = vcmp.ge.f32.partialorder %v1941_v12, %v2016_v56  ;;  %v920_v56 = vld [vmem:[#allocation8 + $0x20] sm:$0xff] }
 0x277   :  { %v2024_v60 = vpop.eup %1566  ;;  %1578 = vpow2.f32 %v622_v55  ;;  %v1107_v8 = vsel %vm1091_vm12, 1, %v1744_v17  ;;  %vm1092_vm13 = vcmp.ge.f32.partialorder %v1953_v18, %v2018_v57  ;;  %v931_v18 = vld [vmem:[#allocation8 + $0x78] sm:$0xff] }
 0x278   :  { %v624_v61 = vmul.f32 1.442695, %v601_v58  ;;  %v626_v62 = vmul.f32 1.442695, %v602_v59  ;;  %v642_v63 = vsel %vm545_vm0, %v2024_v60, 0.0  ;;  %1500 = vmatprep.subr.mxu1 %v931_v18  ;;  %v919_v57 = vld [vmem:[#allocation8 + $0x18] sm:$0xff] }
 0x279   :  { %v2028_v0 = vpop.xlane.xlu1 %574  ;;  %v2030_v3 = vpop.xlane.xlu0 %577  ;;  %643 = vadd.xlane.f32.xlu0 %v642_v63  ;;  %1501 = vmatpush3.msra.mxu1 %v931_v18 }
 0x27a   :  { %1580 = vpow2.f32 %v624_v61  ;;  %v603_v6 = vsub.f32 %v1949_v16, %v2028_v0  ;;  %v604_v7 = vsub.f32 %v1961_v22, %v2030_v3  ;;  %vm1093_vm4 = vcmp.ge.f32.partialorder %v1949_v16, %v2028_v0  ;;  %1502 = vmatprep.subr.mxu1 %v930_v35  ;;  %v918_v0 = vld [vmem:[#allocation8 + $0x10] sm:$0xff] }
 0x27b   :  { %v2036_v10 = vpop.eup %1568  ;;  %1582 = vpow2.f32 %v626_v62  ;;  %v1109_v1 = vsel %vm1093_vm4, 1, %v1744_v17  ;;  %vm1094_vm14 = vcmp.ge.f32.partialorder %v1961_v22, %v2030_v3  ;;  %v929_v22 = vld [vmem:[#allocation8 + $0x68] sm:$0xff]  ;;  %1503 = vmatpush3.msra.mxu1 %v930_v35 }
 0x27c   :  { %v2038_v11 = vpop.eup %1570  ;;  %v628_v14 = vmul.f32 1.442695, %v603_v6  ;;  %v630_v15 = vmul.f32 1.442695, %v604_v7  ;;  %v645_v19 = vsel %vm545_vm0, %v2036_v10, 0.0  ;;  %v1110_v13 = vsel %vm1094_vm14, 1, %v1744_v17  ;;  %1504 = vmatprep.subr.mxu1 %v929_v22 }
 0x27d   :  { %v2042_v20 = vpop.xlane.xlu1 %580  ;;  %v2044_v23 = vpop.xlane.xlu0 %583  ;;  %646 = vadd.xlane.f32.xlu1 %v645_v19  ;;  %v648_v24 = vsel %vm545_vm0, %v2038_v11, 0.0  ;;  %1505 = vmatpush3.msra.mxu1 %v929_v22  ;;  %v917_v3 = vld [vmem:[#allocation8 + $0x8] sm:$0xff] }
 0x27e   :  { %1584 = vpow2.f32 %v628_v14  ;;  %v605_v27 = vsub.f32 %v1959_v21, %v2042_v20  ;;  %v606_v28 = vsub.f32 %v1969_v26, %v2044_v23  ;;  %649 = vadd.xlane.f32.xlu0 %v648_v24  ;;  %vm1095_vm6 = vcmp.ge.f32.partialorder %v1959_v21, %v2042_v20  ;;  %1506 = vmatprep.subr.mxu1 %v928_v39 }
 0x27f   :  { %v2052_v31 = vpop.eup %1572  ;;  %1586 = vpow2.f32 %v630_v15  ;;  %v1111_v5 = vsel %vm1095_vm6, 1, %v1744_v17  ;;  %vm1096_vm15 = vcmp.ge.f32.partialorder %v1969_v26, %v2044_v23  ;;  %v927_v26 = vld [vmem:[#allocation8 + $0x58] sm:$0xff]  ;;  %1507 = vmatpush3.msra.mxu1 %v928_v39 }
 0x280   :  { %v2054_v32 = vpop.eup %1574  ;;  %v632_v33 = vmul.f32 1.442695, %v605_v27  ;;  %v634_v34 = vmul.f32 1.442695, %v606_v28  ;;  %v651_v36 = vsel %vm545_vm0, %v2052_v31, 0.0  ;;  %v1112_v12 = vsel %vm1096_vm15, 1, %v1744_v17  ;;  %1508 = vmatprep.subr.mxu1 %v927_v26 }
 0x281   :  { %v2058_v37 = vpop.xlane.xlu1 %586  ;;  %652 = vadd.xlane.f32.xlu1 %v651_v36  ;;  %v654_v40 = vsel %vm545_vm0, %v2054_v32, 0.0  ;;  %v2062_v41 = vpop.xlane.xlu0 %589  ;;  %1509 = vmatpush3.msra.mxu1 %v927_v26 }
 0x282   :  { %1588 = vpow2.f32 %v632_v33  ;;  %v607_v42 = vsub.f32 %v1967_v25, %v2058_v37  ;;  %655 = vadd.xlane.f32.xlu0 %v654_v40  ;;  %v608_v43 = vsub.f32 %v1977_v30, %v2062_v41  ;;  %vm1097_vm8 = vcmp.ge.f32.partialorder %v1967_v25, %v2058_v37  ;;  %1510 = vmatprep.subr.mxu1 %v926_v44 }
 0x283   :  { %v2068_v46 = vpop.eup %1576  ;;  %1590 = vpow2.f32 %v634_v34  ;;  %v1113_v16 = vsel %vm1097_vm8, 1, %v1744_v17  ;;  %v1106_v25 = vsel %vm1090_vm11, 1, %v1744_v17  ;;  %1511 = vmatpush3.msra.mxu1 %v926_v44 }
 0x284   :  { %v2070_v47 = vpop.eup %1578  ;;  %v636_v48 = vmul.f32 1.442695, %v607_v42  ;;  %v638_v49 = vmul.f32 1.442695, %v608_v43  ;;  %v657_v52 = vsel %vm545_vm0, %v2068_v46, 0.0 }
 0x285   :  { %658 = vadd.xlane.f32.xlu1 %v657_v52  ;;  %v2074_v53 = vpop.xlane.xlu1 %592  ;;  %v660_v54 = vsel %vm545_vm0, %v2070_v47, 0.0  ;;  %v1102_v52 = vsel %vm1086_vm3, 1, %v1744_v17 }
 0x286   :  { %1592 = vpow2.f32 %v636_v48  ;;  %v609_v55 = vsub.f32 %v1975_v29, %v2074_v53  ;;  %661 = vadd.xlane.f32.xlu0 %v660_v54  ;;  %v1101_v48 = vsel %vm1085_vm1, 1, %v1744_v17  ;;  %vm1099_vm10 = vcmp.ge.f32.partialorder %v1975_v29, %v2074_v53 }
 0x287   :  { %v2080_v58 = vpop.eup %1580  ;;  %1594 = vpow2.f32 %v638_v49  ;;  %v1100_v49 = vsel %vm1084_vm2, 1, %v1744_v17  ;;  %v1115_v21 = vsel %vm1099_vm10, 1, %v1744_v17  ;;  %v1108_v29 = vsel %vm1092_vm13, 1, %v1744_v17 }
 0x288   :  { %v2082_v59 = vpop.eup %1582  ;;  %v640_v61 = vmul.f32 1.442695, %v609_v55  ;;  %v663_v62 = vsel %vm545_vm0, %v2080_v58, 0.0  ;;  %vm1098_vm1 = vcmp.ge.f32.partialorder %v1977_v30, %v2062_v41  ;;  %v925_v30 = vld [vmem:[#allocation8 + $0x48] sm:$0xff] }
 0x289   :  { %664 = vadd.xlane.f32.xlu1 %v663_v62  ;;  %v666_v63 = vsel %vm545_vm0, %v2082_v59, 0.0  ;;  %v1114_v38 = vsel %vm1098_vm1, 1, %v1744_v17  ;;  %1512 = vmatprep.subr.mxu1 %v925_v30  ;;  %v923_v17 = vld [vmem:[#allocation8 + $0x38] sm:$0xff] }
 0x28a   :  { %1596 = vpow2.f32 %v640_v61  ;;  %667 = vadd.xlane.f32.xlu0 %v666_v63  ;;  %1513 = vmatpush3.msra.mxu1 %v925_v30 }
 0x28b   :  { %v2088_v6 = vpop.eup %1584  ;;  %1514 = vmatprep.subr.mxu1 %v924_v45 }
 0x28c   :  { %v2090_v7 = vpop.eup %1586  ;;  %v669_v14 = vsel %vm545_vm0, %v2088_v6, 0.0  ;;  %1515 = vmatpush3.msra.mxu1 %v924_v45 }
 0x28d   :  { %670 = vadd.xlane.f32.xlu1 %v669_v14  ;;  %v672_v15 = vsel %vm545_vm0, %v2090_v7, 0.0  ;;  %1516 = vmatprep.subr.mxu1 %v923_v17 }
 0x28e   :  { %673 = vadd.xlane.f32.xlu0 %v672_v15  ;;  %1517 = vmatpush3.msra.mxu1 %v923_v17 }
 0x28f   :  { %v2096_v19 = vpop.eup %1588  ;;  %1518 = vmatprep.subr.mxu1 %v922_v50 }
 0x290   :  { %v2098_v24 = vpop.eup %1590  ;;  %v675_v27 = vsel %vm545_vm0, %v2096_v19, 0.0  ;;  %1519 = vmatpush3.msra.mxu1 %v922_v50 }
 0x291   :  { %676 = vadd.xlane.f32.xlu1 %v675_v27  ;;  %v678_v28 = vsel %vm545_vm0, %v2098_v24, 0.0  ;;  %1520 = vmatprep.subr.mxu1 %v921_v51 }
 0x292   :  { %679 = vadd.xlane.f32.xlu0 %v678_v28  ;;  %1521 = vmatpush3.msra.mxu1 %v921_v51 }
 0x293   :  { %v2104_v33 = vpop.eup %1592  ;;  %1522 = vmatprep.subr.mxu1 %v920_v56 }
 0x294   :  { %v2106_v34 = vpop.eup %1594  ;;  %v681_v36 = vsel %vm545_vm0, %v2104_v33, 0.0  ;;  %1523 = vmatpush3.msra.mxu1 %v920_v56 }
 0x295   :  { %682 = vadd.xlane.f32.xlu1 %v681_v36  ;;  %v684_v40 = vsel %vm545_vm0, %v2106_v34, 0.0  ;;  %1524 = vmatprep.subr.mxu1 %v919_v57 }
 0x296   :  { %685 = vadd.xlane.f32.xlu0 %v684_v40  ;;  %1525 = vmatpush3.msra.mxu1 %v919_v57 }
 0x297   :  { %v2112_v42 = vpop.eup %1596  ;;  %1526 = vmatprep.subr.mxu1 %v918_v0 }
 0x298   :  { %v687_v43 = vsel %vm545_vm0, %v2112_v42, 0.0  ;;  %1527 = vmatpush3.msra.mxu1 %v918_v0 }
 0x299   :  { %688 = vadd.xlane.f32.xlu1 %v687_v43  ;;  %1528 = vmatprep.subr.mxu1 %v917_v3 }
 0x29a   :  { %1529 = vmatpush3.msra.mxu1 %v917_v3 }
 0x2aa   :  { %1120 = vperm.xlu1 %1565, %v1101_v48  }
 0x2ac   :  { %1117 = vperm.xlu0 %1564, %v1100_v49  }
 0x2ae   :  { %1123 = vperm.xlu1 %1565, %v1102_v52  }
 0x2b0   :  { %1144 = vperm.xlu0 %1564, %v1109_v1  }
 0x2b2   :  { %1126 = vperm.xlu1 %1565, %v1103_v2  }
 0x2b4   :  { %1150 = vperm.xlu0 %1564, %v1111_v5  }
 0x2b6   :  { %1129 = vperm.xlu1 %1565, %v1104_v4  }
 0x2b8   :  { %1156 = vperm.xlu0 %1564, %v1113_v16  }
 0x2ba   :  { %1132 = vperm.xlu1 %1565, %v1105_v9  }
 0x2bc   :  { %1162 = vperm.xlu0 %1564, %v1115_v21  }
 0x2be   :  { %1135 = vperm.xlu1 %1565, %v1106_v25  }
 0x2c2   :  { %1138 = vperm.xlu1 %1565, %v1107_v8  }
 0x2c6   :  { %1141 = vperm.xlu1 %1565, %v1108_v29  }
 0x2ca   :  { %1147 = vperm.xlu1 %1565, %v1110_v13  }
 0x2ce   :  { %1153 = vperm.xlu1 %1565, %v1112_v12  }
 0x2d2   :  { %1159 = vperm.xlu1 %1565, %v1114_v38  }
 0x302   :  { %v644_v20 = vpop.xlane.xlu0 %643 }
 0x303   :  { %1598 = vrcp.f32 %v644_v20 }
 0x306   :  { %v647_v23 = vpop.xlane.xlu1 %646 }
 0x307   :  { %1600 = vrcp.f32 %v647_v23  ;;  %v650_v37 = vpop.xlane.xlu0 %649 }
 0x308   :  { %1602 = vrcp.f32 %v650_v37 }
 0x30a   :  { %v653_v41 = vpop.xlane.xlu1 %652 }
 0x30b   :  { %1604 = vrcp.f32 %v653_v41  ;;  %v656_v53 = vpop.xlane.xlu0 %655 }
 0x30c   :  { %1606 = vrcp.f32 %v656_v53 }
 0x30e   :  { %v659_v54 = vpop.xlane.xlu1 %658 }
 0x30f   :  { %1608 = vrcp.f32 %v659_v54  ;;  %v662_v55 = vpop.xlane.xlu0 %661 }
 0x310   :  { %v1599_v61 = vpop.eup %1598  ;;  %1610 = vrcp.f32 %v662_v55  ;;  %v2199_v55 = vld [vmem:[%s2231_s8] ss:$0 sm:$0xff]  ;;  %s1745_s8 = smov [#allocation10]  }
 0x311   :  { %v706_v62 = vmul.f32 %v1599_v61, %v2024_v60  ;;  %s1217_s1 = sshll.u32 %s1745_s8, 4  ;;  %s1218_s1 = int_to_ptr.vmem [resolvable:$true] %s1217_s1 }
 0x312   :  { %v665_v63 = vpop.xlane.xlu1 %664  ;;  %s1710_s27 = scalar_lea.vmem %s1218_s1, 2048  ;;  %p1715_p7 = scmp.lt.s32.totalorder %s1218_s1, %s1218_s1 }
 0x313   :  { %1612 = vrcp.f32 %v665_v63  ;;  %v668_v14 = vpop.xlane.xlu0 %667  ;;  %1476 = vmatprep.mubr.msk.f32.mxu0 %vm545_vm0, %v706_v62  ;;  %p1711_p6 = scmp.ne.s32.totalorder %s1218_s1, %s1710_s27  ;;  %p1716_p8 = scmp.lt.s32.totalorder %s1710_s27, %s1710_s27 }
 0x314   :  { %v1601_v15 = vpop.eup %1600  ;;  %1614 = vrcp.f32 %v668_v14 }
 0x315   :  { %v1603_v27 = vpop.eup %1602  ;;  %v707_v28 = vmul.f32 %v1601_v15, %v2036_v10  ;;  %p1717_p9 = por %p1716_p8, %p1715_p7 }
 0x316   :  { %v671_v36 = vpop.xlane.xlu1 %670  ;;  %v708_v40 = vmul.f32 %v1603_v27, %v2038_v11 }
 0x317   :  { %1616 = vrcp.f32 %v671_v36  ;;  %v674_v43 = vpop.xlane.xlu0 %673  ;;  %1477 = vmatmul.mubr.msk.f32.vlgmr.msra.gmra.mxu0 %vm545_vm0, %v707_v28  ;;  %p1718_p10 = pnand %p1717_p9, %p1711_p6 }
 0x318   :  { %v1605_v48 = vpop.eup %1604  ;;  %1618 = vrcp.f32 %v674_v43  ;;  %1479 = vmatprep.mubr.msk.f32.mxu0 %vm545_vm0, %v708_v40 }
 0x319   :  { %v1607_v60 = vpop.eup %1606  ;;  %v709_v49 = vmul.f32 %v1605_v48, %v2052_v31 }
 0x31a   :  { %v677_v52 = vpop.xlane.xlu1 %676  ;;  %v710_v1 = vmul.f32 %v1607_v60, %v2054_v32 }
 0x31b   :  { %1620 = vrcp.f32 %v677_v52  ;;  %v680_v2 = vpop.xlane.xlu0 %679  ;;  %1480 = vmatmul.mubr.msk.f32.gmra.mxu0 %vm545_vm0, %v709_v49 }
 0x31c   :  { %v1609_v10 = vpop.eup %1608  ;;  %1622 = vrcp.f32 %v680_v2  ;;  %1482 = vmatprep.mubr.msk.f32.mxu0 %vm545_vm0, %v710_v1 }
 0x31d   :  { %v1611_v11 = vpop.eup %1610  ;;  %v711_v5 = vmul.f32 %v1609_v10, %v2068_v46 }
 0x31e   :  { %v683_v4 = vpop.xlane.xlu1 %682  ;;  %v712_v16 = vmul.f32 %v1611_v11, %v2070_v47 }
 0x31f   :  { %1624 = vrcp.f32 %v683_v4  ;;  %v686_v9 = vpop.xlane.xlu0 %685  ;;  %1483 = vmatmul.mubr.msk.f32.gmra.mxu0 %vm545_vm0, %v711_v5 }
 0x320   :  { %v1613_v31 = vpop.eup %1612  ;;  %1626 = vrcp.f32 %v686_v9  ;;  %1485 = vmatprep.mubr.msk.f32.mxu0 %vm545_vm0, %v712_v16 }
 0x321   :  { %v1615_v32 = vpop.eup %1614  ;;  %v713_v21 = vmul.f32 %v1613_v31, %v2080_v58 }
 0x322   :  { %v689_v25 = vpop.xlane.xlu1 %688  ;;  %v714_v8 = vmul.f32 %v1615_v32, %v2082_v59 }
 0x323   :  { %1628 = vrcp.f32 %v689_v25  ;;  %1486 = vmatmul.mubr.msk.f32.gmra.mxu0 %vm545_vm0, %v713_v21 }
 0x324   :  { %v1617_v46 = vpop.eup %1616  ;;  %1488 = vmatprep.mubr.msk.f32.mxu0 %vm545_vm0, %v714_v8 }
 0x325   :  { %v1619_v47 = vpop.eup %1618  ;;  %v715_v29 = vmul.f32 %v1617_v46, %v2088_v6 }
 0x326   :  { %v716_v13 = vmul.f32 %v1619_v47, %v2090_v7  ;;  %v1121_v23 = vpop.permute.xlu1 %1120 }
 0x327   :  { %1489 = vmatmul.mubr.msk.f32.gmra.mxu0 %vm545_vm0, %v715_v29  ;;  %v1118_v63 = vpop.permute.xlu0 %1117 }
 0x328   :  { %v1621_v12 = vpop.eup %1620  ;;  %1491 = vmatprep.mubr.msk.f32.mxu0 %vm545_vm0, %v716_v13  ;;  %vm1164_vm2 = vcmp.eq.s32.totalorder %v1118_v63, 1 }
 0x329   :  { %v1623_v58 = vpop.eup %1622  ;;  %v717_v18 = vmul.f32 %v1621_v12, %v2096_v19  ;;  %v916_v19 = vld [vmem:[#allocation8] sm:$0xff] }
 0x32a   :  { %v718_v59 = vmul.f32 %v1623_v58, %v2098_v24  ;;  %1530 = vmatprep.subr.mxu1 %v916_v19  ;;  %v1124_v37 = vpop.permute.xlu1 %1123 }
 0x32b   :  { %1492 = vmatmul.mubr.msk.f32.gmra.mxu0 %vm545_vm0, %v717_v18  ;;  %1531 = vmatpush3.msra.mxu1 %v916_v19  ;;  %vm1166_vm4 = vcmp.eq.s32.totalorder %v1124_v37, 1  ;;  %v1145_v2 = vpop.permute.xlu0 %1144 }
 0x32c   :  { %v1625_v35 = vpop.eup %1624  ;;  %1494 = vmatprep.mubr.msk.f32.mxu0 %vm545_vm0, %v718_v59  ;;  %vm1173_vm9 = vcmp.eq.s32.totalorder %v1145_v2, 1 }
 0x32d   :  { %v1627_v38 = vpop.eup %1626  ;;  %v719_v6 = vmul.f32 %v1625_v35, %v2104_v33 }
 0x32e   :  { %v720_v7 = vmul.f32 %v1627_v38, %v2106_v34  ;;  %v1127_v41 = vpop.permute.xlu1 %1126 }
 0x32f   :  { %1495 = vmatmul.mubr.msk.f32.gmra.mxu0 %vm545_vm0, %v719_v6  ;;  %vm1167_vm3 = vcmp.eq.s32.totalorder %v1127_v41, 1  ;;  %v1151_v8 = vpop.permute.xlu0 %1150 }
 0x330   :  { %v1629_v22 = vpop.eup %1628  ;;  %1497 = vmatprep.mubr.msk.f32.mxu0 %vm545_vm0, %v720_v7  ;;  %vm1175_vm11 = vcmp.eq.s32.totalorder %v1151_v8, 1 }
 0x331   :  { %v721_v39 = vmul.f32 %v1629_v22, %v2112_v42 }
 0x332   :  { %v1130_v53 = vpop.permute.xlu1 %1129 }
 0x333   :  { %1498 = vmatmul.mubr.msk.f32.gmra.mxu0 %vm545_vm0, %v721_v39  ;;  %vm1165_vm0 = vcmp.eq.s32.totalorder %v1121_v23, 1  ;;  %vm1168_vm6 = vcmp.eq.s32.totalorder %v1130_v53, 1  ;;  %v1157_v6 = vpop.permute.xlu0 %1156 }
 0x334   :  { %vm1177_vm13 = vcmp.eq.s32.totalorder %v1157_v6, 1 }
 0x336   :  { %v1133_v54 = vpop.permute.xlu1 %1132 }
 0x337   :  { %vm1169_vm5 = vcmp.eq.s32.totalorder %v1133_v54, 1 }
 0x33a   :  { %v1136_v61 = vpop.permute.xlu1 %1135 }
 0x33b   :  { %vm1170_vm8 = vcmp.eq.s32.totalorder %v1136_v61, 1 }
 0x33e   :  { %v1139_v40 = vpop.permute.xlu1 %1138 }
 0x33f   :  { %vm1171_vm7 = vcmp.eq.s32.totalorder %v1139_v40, 1 }
 0x342   :  { %v1142_v4 = vpop.permute.xlu1 %1141 }
 0x343   :  { %vm1172_vm10 = vcmp.eq.s32.totalorder %v1142_v4, 1 }
 0x346   :  { %v1148_v13 = vpop.permute.xlu1 %1147 }
 0x347   :  { %vm1174_vm12 = vcmp.eq.s32.totalorder %v1148_v13, 1 }
 0x34a   :  { %v1154_v19 = vpop.permute.xlu1 %1153 }
 0x34b   :  { %vm1176_vm14 = vcmp.eq.s32.totalorder %v1154_v19, 1 }
 0x3d7   :  { %v1478_v24 = vpop.f32.mrf.mxu0 }
 0x3d9   :  { %v837_v26 = vpop.f32.mrf.mxu0 }
 0x3da   :  { %1532 = vmatprep.mubr.f32.mxu1 %v837_v26 }
 0x3db   :  { %v1481_v44 = vpop.f32.mrf.mxu0  ;;  %1533 = vmatmul.mubr.f32.vlgmr.msra.gmra.mxu1 %v1478_v24 }
 0x3dd   :  { %v847_v33 = vpop.f32.mrf.mxu0 }
 0x3de   :  { %1535 = vmatprep.mubr.f32.mxu1 %v847_v33 }
 0x3df   :  { %v1484_v34 = vpop.f32.mrf.mxu0  ;;  %1536 = vmatmul.mubr.f32.gmra.mxu1 %v1481_v44 }
 0x3e1   :  { %v857_v30 = vpop.f32.mrf.mxu0 }
 0x3e2   :  { %1538 = vmatprep.mubr.f32.mxu1 %v857_v30 }
 0x3e3   :  { %v1487_v45 = vpop.f32.mrf.mxu0  ;;  %1539 = vmatmul.mubr.f32.gmra.mxu1 %v1484_v34 }
 0x3e5   :  { %v867_v17 = vpop.f32.mrf.mxu0 }
 0x3e6   :  { %1541 = vmatprep.mubr.f32.mxu1 %v867_v17 }
 0x3e7   :  { %v1490_v42 = vpop.f32.mrf.mxu0  ;;  %1542 = vmatmul.mubr.f32.gmra.mxu1 %v1487_v45  ;;  %v1163_v45 = vpop.permute.xlu0 %1162 }
 0x3e8   :  { %vm1179_vm15 = vcmp.eq.s32.totalorder %v1163_v45, 1 }
 0x3e9   :  { %v877_v50 = vpop.f32.mrf.mxu0 }
 0x3ea   :  { %1544 = vmatprep.mubr.f32.mxu1 %v877_v50 }
 0x3eb   :  { %v1493_v51 = vpop.f32.mrf.mxu0  ;;  %1545 = vmatmul.mubr.f32.gmra.mxu1 %v1490_v42 }
 0x3ed   :  { %v887_v56 = vpop.f32.mrf.mxu0 }
 0x3ee   :  { %1547 = vmatprep.mubr.f32.mxu1 %v887_v56 }
 0x3ef   :  { %v1496_v57 = vpop.f32.mrf.mxu0  ;;  %1548 = vmatmul.mubr.f32.gmra.mxu1 %v1493_v51  ;;  %v1160_v51 = vpop.permute.xlu1 %1159 }
 0x3f0   :  { %vm1178_vm1 = vcmp.eq.s32.totalorder %v1160_v51, 1 }
 0x3f1   :  { %v897_v0 = vpop.f32.mrf.mxu0 }
 0x3f2   :  { %1550 = vmatprep.mubr.f32.mxu1 %v897_v0 }
 0x3f3   :  { %v1499_v3 = vpop.f32.mrf.mxu0  ;;  %1551 = vmatmul.mubr.f32.gmra.mxu1 %v1496_v57 }
 0x3f5   :  { %v907_v20 = vpop.f32.mrf.mxu0 }
 0x3f6   :  { %1553 = vmatprep.mubr.f32.mxu1 %v907_v20 }
 0x3f7   :  { %1554 = vmatmul.mubr.f32.gmra.mxu1 %v1499_v3 }
 0x49b   :  { %v1534_v62 = vpop.f32.mrf.mxu1 }
 0x49c   :  { %v1011_v14 = vadd.f32 %v1534_v62, %v2199_v55 }
 0x49d   :  { %v1005_v15 = vpop.f32.mrf.mxu1 }
 0x49e   :  { %v1181_v27 = vsel %vm1165_vm0, 0.0, %v1011_v14  ;;  %v1006_v28 = vadd.f32 %v2199_v55, %v1005_v15 }
 0x49f   :  { %1197 = vst [vmem:[#allocation10 + $0x8] sm:$0xff] %v1181_v27  ;;  %v1537_v36 = vpop.f32.mrf.mxu1 }
 0x4a0   :  { %v1180_v43 = vsel %vm1164_vm2, 0.0, %v1006_v28  ;;  %v1021_v48 = vadd.f32 %v1537_v36, %v2199_v55 }
 0x4a1   :  { %1196 = vst [vmem:[#allocation10] sm:$0xff] %v1180_v43  ;;  %v1015_v60 = vpop.f32.mrf.mxu1 }
 0x4a2   :  { %v1183_v49 = vsel %vm1167_vm3, 0.0, %v1021_v48  ;;  %v1016_v52 = vadd.f32 %v2199_v55, %v1015_v60 }
 0x4a3   :  { %1199 = vst [vmem:[#allocation10 + $0x18] sm:$0xff] %v1183_v49  ;;  %v1540_v1 = vpop.f32.mrf.mxu1 }
 0x4a4   :  { %v1182_v10 = vsel %vm1166_vm4, 0.0, %v1016_v52  ;;  %v1031_v11 = vadd.f32 %v1540_v1, %v2199_v55 }
 0x4a5   :  { %1198 = vst [vmem:[#allocation10 + $0x10] sm:$0xff] %v1182_v10  ;;  %v1025_v5 = vpop.f32.mrf.mxu1 }
 0x4a6   :  { %v1185_v16 = vsel %vm1169_vm5, 0.0, %v1031_v11  ;;  %v1026_v9 = vadd.f32 %v2199_v55, %v1025_v5 }
 0x4a7   :  { %1201 = vst [vmem:[#allocation10 + $0x28] sm:$0xff] %v1185_v16  ;;  %v1543_v31 = vpop.f32.mrf.mxu1 }
 0x4a8   :  { %v1184_v32 = vsel %vm1168_vm6, 0.0, %v1026_v9  ;;  %v1041_v21 = vadd.f32 %v1543_v31, %v2199_v55 }
 0x4a9   :  { %1200 = vst [vmem:[#allocation10 + $0x20] sm:$0xff] %v1184_v32  ;;  %v1035_v25 = vpop.f32.mrf.mxu1 }
 0x4aa   :  { %v1187_v46 = vsel %vm1171_vm7, 0.0, %v1041_v21  ;;  %v1036_v47 = vadd.f32 %v2199_v55, %v1035_v25 }
 0x4ab   :  { %1203 = vst [vmem:[#allocation10 + $0x38] sm:$0xff] %v1187_v46  ;;  %v1546_v29 = vpop.f32.mrf.mxu1 }
 0x4ac   :  { %v1186_v12 = vsel %vm1170_vm8, 0.0, %v1036_v47  ;;  %v1051_v58 = vadd.f32 %v1546_v29, %v2199_v55 }
 0x4ad   :  { %1202 = vst [vmem:[#allocation10 + $0x30] sm:$0xff] %v1186_v12  ;;  %v1045_v18 = vpop.f32.mrf.mxu1 }
 0x4ae   :  { %v1189_v59 = vsel %vm1173_vm9, 0.0, %v1051_v58  ;;  %v1046_v35 = vadd.f32 %v2199_v55, %v1045_v18 }
 0x4af   :  { %1205 = vst [vmem:[#allocation10 + $0x48] sm:$0xff] %v1189_v59  ;;  %v1549_v38 = vpop.f32.mrf.mxu1 }
 0x4b0   :  { %v1188_v7 = vsel %vm1172_vm10, 0.0, %v1046_v35  ;;  %v1061_v22 = vadd.f32 %v1549_v38, %v2199_v55 }
 0x4b1   :  { %1204 = vst [vmem:[#allocation10 + $0x40] sm:$0xff] %v1188_v7  ;;  %v1055_v39 = vpop.f32.mrf.mxu1 }
 0x4b2   :  { %v1191_v24 = vsel %vm1175_vm11, 0.0, %v1061_v22  ;;  %v1056_v26 = vadd.f32 %v2199_v55, %v1055_v39 }
 0x4b3   :  { %1207 = vst [vmem:[#allocation10 + $0x58] sm:$0xff] %v1191_v24  ;;  %v1552_v44 = vpop.f32.mrf.mxu1 }
 0x4b4   :  { %v1190_v33 = vsel %vm1174_vm12, 0.0, %v1056_v26  ;;  %v1071_v34 = vadd.f32 %v1552_v44, %v2199_v55 }
 0x4b5   :  { %1206 = vst [vmem:[#allocation10 + $0x50] sm:$0xff] %v1190_v33  ;;  %v1065_v30 = vpop.f32.mrf.mxu1 }
 0x4b6   :  { %v1193_v17 = vsel %vm1177_vm13, 0.0, %v1071_v34  ;;  %v1066_v42 = vadd.f32 %v2199_v55, %v1065_v30 }
 0x4b7   :  { %1209 = vst [vmem:[#allocation10 + $0x68] sm:$0xff] %v1193_v17  ;;  %v1555_v50 = vpop.f32.mrf.mxu1 }
 0x4b8   :  { %v1192_v56 = vsel %vm1176_vm14, 0.0, %v1066_v42  ;;  %v1081_v57 = vadd.f32 %v1555_v50, %v2199_v55 }
 0x4b9   :  { %1208 = vst [vmem:[#allocation10 + $0x60] sm:$0xff] %v1192_v56  ;;  %v1075_v0 = vpop.f32.mrf.mxu1 }
 0x4ba   :  { %v1195_v3 = vsel %vm1179_vm15, 0.0, %v1081_v57  ;;  %v1076_v20 = vadd.f32 %v2199_v55, %v1075_v0 }
 0x4bb   :  { %1211 = vst [vmem:[#allocation10 + $0x78] sm:$0xff] %v1195_v3 }
 0x4bc   :  { %v1194_v23 = vsel %vm1178_vm1, 0.0, %v1076_v20 }
 0x4bd   :  { %1210 = vst [vmem:[#allocation10 + $0x70] sm:$0xff] %v1194_v23 }
 0x4be   :  { %1721 = shalt.err (!%p1718_p10)
}
 0x4bf   :  { %1223 = dma.vmem_to_hbm [thread:$0]  %s1218_s1, 2048, %s2232_s9, [#allocation4], %s1740_s14, %s1740_s14, %s1741_s15  }
 0x4c0   :  { %1736 = dma.done.wait [#allocation4], 2048  }
 0x4c1   :  { %1737 = vsyncadd [#allocation4], 4294965248 }
 0x4c2   :  { %1227 = vsyncpa [#allocation3], 1 }
 0x4c3   :  { %1228 = vsyncpa [#allocation6], 1 }
 0x4c4   :  { %1229 = vsyncpa [#allocation9], 1 }
 0x4c5   :  { %1230 = vsyncpa [#allocation4], 1 }

</bundles_post_ra>
